<compile_context>
chip_gen: v7x
topology: tpu7x:2x2x1
jax: 0.10.0
libtpu: 0.0.40
codegen_flags: <defaults>
</compile_context>

<pallas_src>
import functools

import jax
import jax.numpy as jnp
from jax import lax
from jax.experimental import pallas as pl
from jax.experimental.pallas import tpu as pltpu

LANE = 128


def _round_up(n, m):
    return (n + m - 1) // m * m


def _device_kind():
    try:
        return jax.devices()[0].device_kind.lower()
    except Exception:
        return ""


def _vmem_budget_bytes():
    """Per-generation scoped-VMEM budget (v7x has only 64 MiB per TensorCore)."""
    if "v7" in _device_kind():
        return 48 * 1024 * 1024
    return 96 * 1024 * 1024          # v4/v5e/v5p/v6e: 128 MiB physical VMEM


def _num_batch_blocks(batch):
    """Split the batch across v7x's two TensorCores when it is big enough."""
    if "v7" in _device_kind() and batch >= 16 and batch % 16 == 0:
        return 2
    return 1


# ---------------------------------------------------------------------------
# Fused kernel: per-chunk input projection + serial LSTM recurrence + final fc
# ---------------------------------------------------------------------------
def lstm_fused_kernel(x_ref, wih_ref, whh_ref, b_ref, fcw_ref, fcb_ref,
                      out_ref, xp_ref, h_ref, c_ref,
                      *, seq_len, mask_tail, unroll):
    s = pl.program_id(1)                       # sequence-chunk index (serial axis)

    @pl.when(s == 0)
    def _init():
        h_ref[...] = jnp.zeros_like(h_ref)
        c_ref[...] = jnp.zeros_like(c_ref)
        out_ref[...] = jnp.zeros_like(out_ref)   # cheap insurance for the output tile

    t_chunk, b_blk, emb = x_ref.shape
    hp = h_ref.shape[-1]                       # lane-padded hidden width
    g_w = whh_ref.shape[-1]                    # 4 * hp
    wdt = wih_ref.dtype                        # bf16 (default) or f32

    # ---- fused input projection for the whole chunk: one MXU-friendly matmul ----
    x2d = x_ref[...].reshape(t_chunk * b_blk, emb).astype(wdt)
    xp = jnp.dot(x2d, wih_ref[...], preferred_element_type=jnp.float32)
    xp_ref[...] = (xp + b_ref[...]).reshape(t_chunk, b_blk, g_w)

    whh = whh_ref[...]                         # resident (Hp, 4*Hp) weight panel

    def step(t, carry):
        h, c = carry
        gates = xp_ref[t] + jnp.dot(h.astype(wdt), whh,
                                    preferred_element_type=jnp.float32)
        i_g = jax.nn.sigmoid(gates[:, 0 * hp:1 * hp])   # lane-aligned slices
        f_g = jax.nn.sigmoid(gates[:, 1 * hp:2 * hp])
        g_g = jnp.tanh(gates[:, 2 * hp:3 * hp])
        o_g = jax.nn.sigmoid(gates[:, 3 * hp:4 * hp])
        c_new = f_g * c + i_g * g_g
        h_new = o_g * jnp.tanh(c_new)
        if mask_tail:
            # Padded tail timesteps (t_global >= seq_len) must not update the state.
            valid = (s * t_chunk + t) < seq_len
            h_new = jnp.where(valid, h_new, h)
            c_new = jnp.where(valid, c_new, c)
        return (h_new, c_new)

    h, c = lax.fori_loop(0, t_chunk, step, (h_ref[...], c_ref[...]),
                         unroll=unroll)
    h_ref[...] = h
    c_ref[...] = c

    # Final linear layer on the last hidden state: VPU/XLU reduction instead of an
    # N=1 MXU matmul.  (dropout = 0.0 -> identity.)
    @pl.when(s == pl.num_programs(1) - 1)
    def _final():
        out_ref[...] = (jnp.sum(h * fcw_ref[...], axis=-1, keepdims=True)
                        + fcb_ref[...])


def rnn_forward(x, w_ih, w_hh, b_ih, b_hh, fc_w, fc_b, *,
                param_dtype=jnp.bfloat16, t_chunk=None, unroll=4):
    """x: (seq, batch, emb) f32.  Returns (batch, 1) f32 == fc(h_T)."""
    S, B, E = x.shape
    H = w_hh.shape[1]
    Hp = _round_up(H, LANE)            # per-gate lane-aligned hidden width
    G = 4 * Hp

    # ---- host-side parameter re-layout (transpose + per-gate zero padding) ----
    def gates_transposed_padded(w):            # (4H, in) -> (in, 4*Hp)
        inp = w.shape[1]
        out = jnp.zeros((inp, G), jnp.float32)
        for g in range(4):
            out = out.at[:, g * Hp:g * Hp + H].set(
                jnp.transpose(w[g * H:(g + 1) * H, :]))
        return out

    w_ih_p = gates_transposed_padded(w_ih).astype(param_dtype)            # (E, 4Hp)
    w_hh_p = jnp.zeros((Hp, G), jnp.float32).at[:H, :].set(
        gates_transposed_padded(w_hh)).astype(param_dtype)                # (Hp, 4Hp)

    b = (b_ih + b_hh).astype(jnp.float32)
    b_p = jnp.zeros((1, G), jnp.float32)
    for g in range(4):
        b_p = b_p.at[0, g * Hp:g * Hp + H].set(b[g * H:(g + 1) * H])

    fc_row = jnp.zeros((1, Hp), jnp.float32).at[0, :H].set(fc_w[0, :])
    fc_b2 = jnp.reshape(fc_b, (1, 1)).astype(jnp.float32)

    # ---- per-generation batch split (v7x megacore) and VMEM budget ----
    nb = _num_batch_blocks(B)
    Bb = B // nb
    budget = _vmem_budget_bytes()
    wbytes = jnp.dtype(param_dtype).itemsize

    # ---- sequence-chunk sizing from the VMEM budget (no T=1 fallback) ----
    if t_chunk is None:
        resident = ((E * G + Hp * G) * wbytes        # resident weight panels
                    + 2 * Bb * Hp * 4                # h/c scratch
                    + (G + Hp + 8) * 4 + 65536)      # bias/fc rows + slack
        per_t = Bb * G * 4 + 2 * Bb * E * 4          # xp scratch + double-buffered x
        T = int(max(1, (int(budget * 0.75) - resident) // per_t))
        T = int(min(T, 64, S))
        if T >= 8:
            T = (T // 8) * 8
    else:
        T = int(min(t_chunk, S))

    n_chunks = (S + T - 1) // T
    S_pad = n_chunks * T
    mask_tail = S_pad != S
    x_in = x.astype(jnp.float32)
    if mask_tail:
        x_in = jnp.pad(x_in, ((0, S_pad - S), (0, 0), (0, 0)))

    kernel = functools.partial(lstm_fused_kernel, seq_len=S,
                               mask_tail=mask_tail,
                               unroll=max(1, min(unroll, T)))

    out = pl.pallas_call(
        kernel,
        out_shape=jax.ShapeDtypeStruct((B, 1), jnp.float32),
        grid_spec=pltpu.PrefetchScalarGridSpec(
            num_scalar_prefetch=0,
            grid=(nb, n_chunks),
            in_specs=[
                pl.BlockSpec((T, Bb, E), lambda bblk, s: (s, bblk, 0)),  # streamed x
                # Resident weights: whole-array VMEM, no pipelined double-buffering.
                pl.BlockSpec(memory_space=pltpu.MemorySpace.VMEM),   # W_ih^T
                pl.BlockSpec(memory_space=pltpu.MemorySpace.VMEM),   # W_hh^T
                pl.BlockSpec(memory_space=pltpu.MemorySpace.VMEM),   # bias
                pl.BlockSpec(memory_space=pltpu.MemorySpace.VMEM),   # fc weight row
                pl.BlockSpec(memory_space=pltpu.MemorySpace.VMEM),   # fc bias
            ],
            out_specs=pl.BlockSpec((Bb, 1), lambda bblk, s: (bblk, 0)),
            scratch_shapes=[
                pltpu.VMEM((T, Bb, G), jnp.float32),   # per-chunk x_proj
                pltpu.VMEM((Bb, Hp), jnp.float32),     # h state
                pltpu.VMEM((Bb, Hp), jnp.float32),     # c state
            ],
        ),
        compiler_params=pltpu.CompilerParams(
            dimension_semantics=("parallel", "arbitrary"),   # batch x serial sequence
            vmem_limit_bytes=budget),
    )(x_in, w_ih_p, w_hh_p, b_p, fc_row, fc_b2)
    return out


def rnn_forward_ref(x, w_ih, w_hh, b_ih, b_hh, fc_w, fc_b):
    """Pure-JAX reference (PyTorch LSTM semantics, gate order i,f,g,o)."""
    S, B, E = x.shape
    H = w_hh.shape[1]
    h = jnp.zeros((B, H), jnp.float32)
    c = jnp.zeros((B, H), jnp.float32)

    def step(carry, x_t):
        h, c = carry
        gates = x_t @ w_ih.T + h @ w_hh.T + b_ih + b_hh
        i = jax.nn.sigmoid(gates[:, 0 * H:1 * H])
        f = jax.nn.sigmoid(gates[:, 1 * H:2 * H])
        g = jnp.tanh(gates[:, 2 * H:3 * H])
        o = jax.nn.sigmoid(gates[:, 3 * H:4 * H])
        c = f * c + i * g
        h = o * jnp.tanh(c)
        return (h, c), None

    (h, c), _ = jax.lax.scan(step, (h, c), x)
    return h @ fc_w.T + fc_b


if __name__ == "__main__":
    # Small shapes consistent with the module's forward (scaled down from 400/800).
    SEQ, BATCH, EMB, HID = 16, 8, 32, 32

    key = jax.random.PRNGKey(0)
    k = jax.random.split(key, 7)
    bound = 1.0 / (HID ** 0.5)   # PyTorch LSTM/Linear-style uniform init

    x = jax.random.normal(k[0], (SEQ, BATCH, EMB), jnp.float32)
    w_ih = jax.random.uniform(k[1], (4 * HID, EMB), jnp.float32, -bound, bound)
    w_hh = jax.random.uniform(k[2], (4 * HID, HID), jnp.float32, -bound, bound)
    b_ih = jax.random.uniform(k[3], (4 * HID,), jnp.float32, -bound, bound)
    b_hh = jax.random.uniform(k[4], (4 * HID,), jnp.float32, -bound, bound)
    fc_w = jax.random.uniform(k[5], (1, HID), jnp.float32, -bound, bound)
    fc_b = jax.random.uniform(k[6], (1,), jnp.float32, -bound, bound)

    # 1) Exact algorithmic check: f32 weights, T=4 exercises cross-chunk h/c carry.
    out = rnn_forward(x, w_ih, w_hh, b_ih, b_hh, fc_w, fc_b,
                      param_dtype=jnp.float32, t_chunk=4)
    out = jax.block_until_ready(out)
    ref = rnn_forward_ref(x, w_ih, w_hh, b_ih, b_hh, fc_w, fc_b)
    assert out.shape == (BATCH, 1), out.shape
    assert jnp.allclose(out, ref, atol=1e-4, rtol=1e-4), (out, ref)

    # 2) Optimized default path: bf16 weights (f32 accumulation) + masked tail
    #    (S=13 not divisible by T=4 -> padded sequence with in-kernel masking).
    x13 = x[:13]
    out_bf = rnn_forward(x13, w_ih, w_hh, b_ih, b_hh, fc_w, fc_b, t_chunk=4)
    out_bf = jax.block_until_ready(out_bf)
    ref13 = rnn_forward_ref(x13, w_ih, w_hh, b_ih, b_hh, fc_w, fc_b)
    assert out_bf.shape == (BATCH, 1), out_bf.shape
    assert jnp.allclose(out_bf, ref13, atol=5e-2, rtol=5e-2), (out_bf, ref13)

    print("KERNEL_OK")
</pallas_src>

<mosaic_0001>
module attributes {stable_mosaic.version = 11 : i64} {
  func.func @lstm_fused_kernel(%arg0: i32, %arg1: i32, %arg2: memref<4x8x32xf32, #tpu.memory_space<vmem>>, %arg3: memref<32x512xf32, #tpu.memory_space<vmem>>, %arg4: memref<128x512xf32, #tpu.memory_space<vmem>>, %arg5: memref<1x512xf32, #tpu.memory_space<vmem>>, %arg6: memref<1x128xf32, #tpu.memory_space<vmem>>, %arg7: memref<1x1xf32, #tpu.memory_space<vmem>>, %arg8: memref<8x1xf32, #tpu.memory_space<vmem>>, %arg9: memref<4x8x512xf32, #tpu.memory_space<vmem>>, %arg10: memref<8x128xf32, #tpu.memory_space<vmem>>, %arg11: memref<8x128xf32, #tpu.memory_space<vmem>>) attributes {dimension_semantics = [#tpu.dimension_semantics<parallel>, #tpu.dimension_semantics<arbitrary>], iteration_bounds = array<i64: 1, 4>, scalar_prefetch = 0 : i64, scratch_operands = 3 : i64, tpu.core_type = #tpu.core_type<tc>, window_params = [{transform_indices = @transform_0, window_bounds = array<i64: 4, 8, 32>}, {pipeline_mode = #tpu.pipeline_mode<synchronous>, transform_indices = @transform_1, window_bounds = array<i64: 32, 512>}, {pipeline_mode = #tpu.pipeline_mode<synchronous>, transform_indices = @transform_2, window_bounds = array<i64: 128, 512>}, {pipeline_mode = #tpu.pipeline_mode<synchronous>, transform_indices = @transform_3, window_bounds = array<i64: 1, 512>}, {pipeline_mode = #tpu.pipeline_mode<synchronous>, transform_indices = @transform_4, window_bounds = array<i64: 1, 128>}, {pipeline_mode = #tpu.pipeline_mode<synchronous>, transform_indices = @transform_5, window_bounds = array<i64: 1, 1>}, {transform_indices = @transform_6, window_bounds = array<i64: 8, 1>}]} {
    %c0_i32 = arith.constant 0 : i32
    %0 = arith.cmpi eq, %arg1, %c0_i32 : i32
    %1 = arith.extui %0 : i1 to i32
    %c0_i32_0 = arith.constant 0 : i32
    %2 = arith.cmpi ne, %1, %c0_i32_0 : i32
    scf.if %2 {
      %cst_47 = arith.constant 0.000000e+00 : f32
      %140 = vector.broadcast %cst_47 : f32 to vector<8x128xf32>
      %c0_48 = arith.constant 0 : index
      %c0_49 = arith.constant 0 : index
      %141 = vector.load %arg10[%c0_48, %c0_49] : memref<8x128xf32, #tpu.memory_space<vmem>>, vector<8x128xf32>
      tpu.vector_store %arg10[%c0_48, %c0_49], %140 {strides = array<i32>} : memref<8x128xf32, #tpu.memory_space<vmem>>, vector<8x128xf32>,
      %cst_50 = arith.constant 0.000000e+00 : f32
      %142 = vector.broadcast %cst_50 : f32 to vector<8x128xf32>
      %c0_51 = arith.constant 0 : index
      %c0_52 = arith.constant 0 : index
      %143 = vector.load %arg11[%c0_51, %c0_52] : memref<8x128xf32, #tpu.memory_space<vmem>>, vector<8x128xf32>
      tpu.vector_store %arg11[%c0_51, %c0_52], %142 {strides = array<i32>} : memref<8x128xf32, #tpu.memory_space<vmem>>, vector<8x128xf32>,
      %cst_53 = arith.constant 0.000000e+00 : f32
      %144 = vector.broadcast %cst_53 : f32 to vector<8x1xf32>
      %c0_54 = arith.constant 0 : index
      %c0_55 = arith.constant 0 : index
      %145 = vector.load %arg8[%c0_54, %c0_55] : memref<8x1xf32, #tpu.memory_space<vmem>>, vector<8x1xf32>
      tpu.vector_store %arg8[%c0_54, %c0_55], %144 {strides = array<i32>} : memref<8x1xf32, #tpu.memory_space<vmem>>, vector<8x1xf32>,
    } else {
    }
    %c0 = arith.constant 0 : index
    %c0_1 = arith.constant 0 : index
    %c0_2 = arith.constant 0 : index
    %3 = vector.load %arg2[%c0, %c0_1, %c0_2] : memref<4x8x32xf32, #tpu.memory_space<vmem>>, vector<4x8x32xf32>
    %4 = vector.shape_cast %3 : vector<4x8x32xf32> to vector<32x32xf32>
    %c0_3 = arith.constant 0 : index
    %c0_4 = arith.constant 0 : index
    %5 = vector.load %arg3[%c0_3, %c0_4] : memref<32x512xf32, #tpu.memory_space<vmem>>, vector<32x512xf32>
    %cst = arith.constant dense<0.000000e+00> : vector<32x512xf32>
    %6 = tpu.matmul %4, %5, %cst {dimension_numbers = #tpu.dot_dimension_numbers<[1], [0], [0], [1], [0, 0, 1, 1], [], []>} : vector<32x32xf32>, vector<32x512xf32>, vector<32x512xf32> -> vector<32x512xf32>
    %c0_5 = arith.constant 0 : index
    %c0_6 = arith.constant 0 : index
    %7 = vector.load %arg5[%c0_5, %c0_6] : memref<1x512xf32, #tpu.memory_space<vmem>>, vector<1x512xf32>
    %8 = vector.broadcast %7 : vector<1x512xf32> to vector<32x512xf32>
    %9 = arith.addf %6, %8 : vector<32x512xf32>
    %10 = vector.shape_cast %9 : vector<32x512xf32> to vector<4x8x512xf32>
    %c0_7 = arith.constant 0 : index
    %c0_8 = arith.constant 0 : index
    %c0_9 = arith.constant 0 : index
    %11 = vector.load %arg9[%c0_7, %c0_8, %c0_9] : memref<4x8x512xf32, #tpu.memory_space<vmem>>, vector<4x8x512xf32>
    tpu.vector_store %arg9[%c0_7, %c0_8, %c0_9], %10 {strides = array<i32>} : memref<4x8x512xf32, #tpu.memory_space<vmem>>, vector<4x8x512xf32>,
    %c0_10 = arith.constant 0 : index
    %c0_11 = arith.constant 0 : index
    %12 = vector.load %arg4[%c0_10, %c0_11] : memref<128x512xf32, #tpu.memory_space<vmem>>, vector<128x512xf32>
    %c0_12 = arith.constant 0 : index
    %c0_13 = arith.constant 0 : index
    %13 = vector.load %arg10[%c0_12, %c0_13] : memref<8x128xf32, #tpu.memory_space<vmem>>, vector<8x128xf32>
    %c0_14 = arith.constant 0 : index
    %c0_15 = arith.constant 0 : index
    %14 = vector.load %arg11[%c0_14, %c0_15] : memref<8x128xf32, #tpu.memory_space<vmem>>, vector<8x128xf32>
    %c0_i32_16 = arith.constant 0 : i32
    %15 = arith.index_cast %c0_i32_16 : i32 to index
    %c0_17 = arith.constant 0 : index
    %c0_18 = arith.constant 0 : index
    %16 = vector.load %arg9[%15, %c0_17, %c0_18] : memref<4x8x512xf32, #tpu.memory_space<vmem>>, vector<1x8x512xf32>
    %17 = vector.shape_cast %16 : vector<1x8x512xf32> to vector<8x512xf32>
    %cst_19 = arith.constant dense<0.000000e+00> : vector<8x512xf32>
    %18 = tpu.matmul %13, %12, %cst_19 {dimension_numbers = #tpu.dot_dimension_numbers<[1], [0], [0], [1], [0, 0, 1, 1], [], []>} : vector<8x128xf32>, vector<128x512xf32>, vector<8x512xf32> -> vector<8x512xf32>
    %19 = arith.addf %17, %18 : vector<8x512xf32>
    %20 = vector.extract_strided_slice %19 {offsets = [0, 0], sizes = [8, 128], strides = [1, 1]} : vector<8x512xf32> to vector<8x128xf32>
    %21 = arith.negf %20 : vector<8x128xf32>
    %22 = math.exp %21 : vector<8x128xf32>
    %cst_20 = arith.constant 1.000000e+00 : f32
    %23 = vector.broadcast %cst_20 : f32 to vector<8x128xf32>
    %24 = arith.addf %23, %22 : vector<8x128xf32>
    %25 = arith.divf %23, %24 : vector<8x128xf32>
    %26 = vector.extract_strided_slice %19 {offsets = [0, 128], sizes = [8, 128], strides = [1, 1]} : vector<8x512xf32> to vector<8x128xf32>
    %27 = arith.negf %26 : vector<8x128xf32>
    %28 = math.exp %27 : vector<8x128xf32>
    %cst_21 = arith.constant 1.000000e+00 : f32
    %29 = vector.broadcast %cst_21 : f32 to vector<8x128xf32>
    %30 = arith.addf %29, %28 : vector<8x128xf32>
    %31 = arith.divf %29, %30 : vector<8x128xf32>
    %32 = vector.extract_strided_slice %19 {offsets = [0, 256], sizes = [8, 128], strides = [1, 1]} : vector<8x512xf32> to vector<8x128xf32>
    %33 = math.tanh %32 : vector<8x128xf32>
    %34 = vector.extract_strided_slice %19 {offsets = [0, 384], sizes = [8, 128], strides = [1, 1]} : vector<8x512xf32> to vector<8x128xf32>
    %35 = arith.negf %34 : vector<8x128xf32>
    %36 = math.exp %35 : vector<8x128xf32>
    %cst_22 = arith.constant 1.000000e+00 : f32
    %37 = vector.broadcast %cst_22 : f32 to vector<8x128xf32>
    %38 = arith.addf %37, %36 : vector<8x128xf32>
    %39 = arith.divf %37, %38 : vector<8x128xf32>
    %40 = arith.mulf %31, %14 : vector<8x128xf32>
    %41 = arith.mulf %25, %33 : vector<8x128xf32>
    %42 = arith.addf %40, %41 : vector<8x128xf32>
    %43 = math.tanh %42 : vector<8x128xf32>
    %44 = arith.mulf %39, %43 : vector<8x128xf32>
    %c1_i32 = arith.constant 1 : i32
    %45 = arith.index_cast %c1_i32 : i32 to index
    %c0_23 = arith.constant 0 : index
    %c0_24 = arith.constant 0 : index
    %46 = vector.load %arg9[%45, %c0_23, %c0_24] : memref<4x8x512xf32, #tpu.memory_space<vmem>>, vector<1x8x512xf32>
    %47 = vector.shape_cast %46 : vector<1x8x512xf32> to vector<8x512xf32>
    %cst_25 = arith.constant dense<0.000000e+00> : vector<8x512xf32>
    %48 = tpu.matmul %44, %12, %cst_25 {dimension_numbers = #tpu.dot_dimension_numbers<[1], [0], [0], [1], [0, 0, 1, 1], [], []>} : vector<8x128xf32>, vector<128x512xf32>, vector<8x512xf32> -> vector<8x512xf32>
    %49 = arith.addf %47, %48 : vector<8x512xf32>
    %50 = vector.extract_strided_slice %49 {offsets = [0, 0], sizes = [8, 128], strides = [1, 1]} : vector<8x512xf32> to vector<8x128xf32>
    %51 = arith.negf %50 : vector<8x128xf32>
    %52 = math.exp %51 : vector<8x128xf32>
    %cst_26 = arith.constant 1.000000e+00 : f32
    %53 = vector.broadcast %cst_26 : f32 to vector<8x128xf32>
    %54 = arith.addf %53, %52 : vector<8x128xf32>
    %55 = arith.divf %53, %54 : vector<8x128xf32>
    %56 = vector.extract_strided_slice %49 {offsets = [0, 128], sizes = [8, 128], strides = [1, 1]} : vector<8x512xf32> to vector<8x128xf32>
    %57 = arith.negf %56 : vector<8x128xf32>
    %58 = math.exp %57 : vector<8x128xf32>
    %cst_27 = arith.constant 1.000000e+00 : f32
    %59 = vector.broadcast %cst_27 : f32 to vector<8x128xf32>
    %60 = arith.addf %59, %58 : vector<8x128xf32>
    %61 = arith.divf %59, %60 : vector<8x128xf32>
    %62 = vector.extract_strided_slice %49 {offsets = [0, 256], sizes = [8, 128], strides = [1, 1]} : vector<8x512xf32> to vector<8x128xf32>
    %63 = math.tanh %62 : vector<8x128xf32>
    %64 = vector.extract_strided_slice %49 {offsets = [0, 384], sizes = [8, 128], strides = [1, 1]} : vector<8x512xf32> to vector<8x128xf32>
    %65 = arith.negf %64 : vector<8x128xf32>
    %66 = math.exp %65 : vector<8x128xf32>
    %cst_28 = arith.constant 1.000000e+00 : f32
    %67 = vector.broadcast %cst_28 : f32 to vector<8x128xf32>
    %68 = arith.addf %67, %66 : vector<8x128xf32>
    %69 = arith.divf %67, %68 : vector<8x128xf32>
    %70 = arith.mulf %61, %42 : vector<8x128xf32>
    %71 = arith.mulf %55, %63 : vector<8x128xf32>
    %72 = arith.addf %70, %71 : vector<8x128xf32>
    %73 = math.tanh %72 : vector<8x128xf32>
    %74 = arith.mulf %69, %73 : vector<8x128xf32>
    %c2_i32 = arith.constant 2 : i32
    %75 = arith.index_cast %c2_i32 : i32 to index
    %c0_29 = arith.constant 0 : index
    %c0_30 = arith.constant 0 : index
    %76 = vector.load %arg9[%75, %c0_29, %c0_30] : memref<4x8x512xf32, #tpu.memory_space<vmem>>, vector<1x8x512xf32>
    %77 = vector.shape_cast %76 : vector<1x8x512xf32> to vector<8x512xf32>
    %cst_31 = arith.constant dense<0.000000e+00> : vector<8x512xf32>
    %78 = tpu.matmul %74, %12, %cst_31 {dimension_numbers = #tpu.dot_dimension_numbers<[1], [0], [0], [1], [0, 0, 1, 1], [], []>} : vector<8x128xf32>, vector<128x512xf32>, vector<8x512xf32> -> vector<8x512xf32>
    %79 = arith.addf %77, %78 : vector<8x512xf32>
    %80 = vector.extract_strided_slice %79 {offsets = [0, 0], sizes = [8, 128], strides = [1, 1]} : vector<8x512xf32> to vector<8x128xf32>
    %81 = arith.negf %80 : vector<8x128xf32>
    %82 = math.exp %81 : vector<8x128xf32>
    %cst_32 = arith.constant 1.000000e+00 : f32
    %83 = vector.broadcast %cst_32 : f32 to vector<8x128xf32>
    %84 = arith.addf %83, %82 : vector<8x128xf32>
    %85 = arith.divf %83, %84 : vector<8x128xf32>
    %86 = vector.extract_strided_slice %79 {offsets = [0, 128], sizes = [8, 128], strides = [1, 1]} : vector<8x512xf32> to vector<8x128xf32>
    %87 = arith.negf %86 : vector<8x128xf32>
    %88 = math.exp %87 : vector<8x128xf32>
    %cst_33 = arith.constant 1.000000e+00 : f32
    %89 = vector.broadcast %cst_33 : f32 to vector<8x128xf32>
    %90 = arith.addf %89, %88 : vector<8x128xf32>
    %91 = arith.divf %89, %90 : vector<8x128xf32>
    %92 = vector.extract_strided_slice %79 {offsets = [0, 256], sizes = [8, 128], strides = [1, 1]} : vector<8x512xf32> to vector<8x128xf32>
    %93 = math.tanh %92 : vector<8x128xf32>
    %94 = vector.extract_strided_slice %79 {offsets = [0, 384], sizes = [8, 128], strides = [1, 1]} : vector<8x512xf32> to vector<8x128xf32>
    %95 = arith.negf %94 : vector<8x128xf32>
    %96 = math.exp %95 : vector<8x128xf32>
    %cst_34 = arith.constant 1.000000e+00 : f32
    %97 = vector.broadcast %cst_34 : f32 to vector<8x128xf32>
    %98 = arith.addf %97, %96 : vector<8x128xf32>
    %99 = arith.divf %97, %98 : vector<8x128xf32>
    %100 = arith.mulf %91, %72 : vector<8x128xf32>
    %101 = arith.mulf %85, %93 : vector<8x128xf32>
    %102 = arith.addf %100, %101 : vector<8x128xf32>
    %103 = math.tanh %102 : vector<8x128xf32>
    %104 = arith.mulf %99, %103 : vector<8x128xf32>
    %c3_i32 = arith.constant 3 : i32
    %105 = arith.index_cast %c3_i32 : i32 to index
    %c0_35 = arith.constant 0 : index
    %c0_36 = arith.constant 0 : index
    %106 = vector.load %arg9[%105, %c0_35, %c0_36] : memref<4x8x512xf32, #tpu.memory_space<vmem>>, vector<1x8x512xf32>
    %107 = vector.shape_cast %106 : vector<1x8x512xf32> to vector<8x512xf32>
    %cst_37 = arith.constant dense<0.000000e+00> : vector<8x512xf32>
    %108 = tpu.matmul %104, %12, %cst_37 {dimension_numbers = #tpu.dot_dimension_numbers<[1], [0], [0], [1], [0, 0, 1, 1], [], []>} : vector<8x128xf32>, vector<128x512xf32>, vector<8x512xf32> -> vector<8x512xf32>
    %109 = arith.addf %107, %108 : vector<8x512xf32>
    %110 = vector.extract_strided_slice %109 {offsets = [0, 0], sizes = [8, 128], strides = [1, 1]} : vector<8x512xf32> to vector<8x128xf32>
    %111 = arith.negf %110 : vector<8x128xf32>
    %112 = math.exp %111 : vector<8x128xf32>
    %cst_38 = arith.constant 1.000000e+00 : f32
    %113 = vector.broadcast %cst_38 : f32 to vector<8x128xf32>
    %114 = arith.addf %113, %112 : vector<8x128xf32>
    %115 = arith.divf %113, %114 : vector<8x128xf32>
    %116 = vector.extract_strided_slice %109 {offsets = [0, 128], sizes = [8, 128], strides = [1, 1]} : vector<8x512xf32> to vector<8x128xf32>
    %117 = arith.negf %116 : vector<8x128xf32>
    %118 = math.exp %117 : vector<8x128xf32>
    %cst_39 = arith.constant 1.000000e+00 : f32
    %119 = vector.broadcast %cst_39 : f32 to vector<8x128xf32>
    %120 = arith.addf %119, %118 : vector<8x128xf32>
    %121 = arith.divf %119, %120 : vector<8x128xf32>
    %122 = vector.extract_strided_slice %109 {offsets = [0, 256], sizes = [8, 128], strides = [1, 1]} : vector<8x512xf32> to vector<8x128xf32>
    %123 = math.tanh %122 : vector<8x128xf32>
    %124 = vector.extract_strided_slice %109 {offsets = [0, 384], sizes = [8, 128], strides = [1, 1]} : vector<8x512xf32> to vector<8x128xf32>
    %125 = arith.negf %124 : vector<8x128xf32>
    %126 = math.exp %125 : vector<8x128xf32>
    %cst_40 = arith.constant 1.000000e+00 : f32
    %127 = vector.broadcast %cst_40 : f32 to vector<8x128xf32>
    %128 = arith.addf %127, %126 : vector<8x128xf32>
    %129 = arith.divf %127, %128 : vector<8x128xf32>
    %130 = arith.mulf %121, %102 : vector<8x128xf32>
    %131 = arith.mulf %115, %123 : vector<8x128xf32>
    %132 = arith.addf %130, %131 : vector<8x128xf32>
    %133 = math.tanh %132 : vector<8x128xf32>
    %134 = arith.mulf %129, %133 : vector<8x128xf32>
    %c4_i32 = arith.constant 4 : i32
    %c0_41 = arith.constant 0 : index
    %c0_42 = arith.constant 0 : index
    %135 = vector.load %arg10[%c0_41, %c0_42] : memref<8x128xf32, #tpu.memory_space<vmem>>, vector<8x128xf32>
    tpu.vector_store %arg10[%c0_41, %c0_42], %134 {strides = array<i32>} : memref<8x128xf32, #tpu.memory_space<vmem>>, vector<8x128xf32>,
    %c0_43 = arith.constant 0 : index
    %c0_44 = arith.constant 0 : index
    %136 = vector.load %arg11[%c0_43, %c0_44] : memref<8x128xf32, #tpu.memory_space<vmem>>, vector<8x128xf32>
    tpu.vector_store %arg11[%c0_43, %c0_44], %132 {strides = array<i32>} : memref<8x128xf32, #tpu.memory_space<vmem>>, vector<8x128xf32>,
    %c3_i32_45 = arith.constant 3 : i32
    %137 = arith.cmpi eq, %arg1, %c3_i32_45 : i32
    %138 = arith.extui %137 : i1 to i32
    %c0_i32_46 = arith.constant 0 : i32
    %139 = arith.cmpi ne, %138, %c0_i32_46 : i32
    scf.if %139 {
      %c0_47 = arith.constant 0 : index
      %c0_48 = arith.constant 0 : index
      %140 = vector.load %arg6[%c0_47, %c0_48] : memref<1x128xf32, #tpu.memory_space<vmem>>, vector<1x128xf32>
      %141 = vector.broadcast %140 : vector<1x128xf32> to vector<8x128xf32>
      %142 = arith.mulf %134, %141 : vector<8x128xf32>
      %cst_49 = arith.constant dense<0.000000e+00> : vector<8xf32>
      %143 = vector.multi_reduction <add>, %142, %cst_49 [1] : vector<8x128xf32> to vector<8xf32>
      %144 = vector.shape_cast %143 : vector<8xf32> to vector<8x1xf32>
      %c0_50 = arith.constant 0 : index
      %c0_51 = arith.constant 0 : index
      %145 = vector.load %arg7[%c0_50, %c0_51] : memref<1x1xf32, #tpu.memory_space<vmem>>, vector<1x1xf32>
      %146 = vector.broadcast %145 : vector<1x1xf32> to vector<8x1xf32>
      %147 = arith.addf %144, %146 : vector<8x1xf32>
      %c0_52 = arith.constant 0 : index
      %c0_53 = arith.constant 0 : index
      %148 = vector.load %arg8[%c0_52, %c0_53] : memref<8x1xf32, #tpu.memory_space<vmem>>, vector<8x1xf32>
      tpu.vector_store %arg8[%c0_52, %c0_53], %147 {strides = array<i32>} : memref<8x1xf32, #tpu.memory_space<vmem>>, vector<8x1xf32>,
    } else {
    }
    return
  }
  func.func @transform_0(%arg0: i32, %arg1: i32) -> (i32, i32, i32) {
    %c0_i32 = arith.constant 0 : i32
    %c0_i32_0 = arith.constant 0 : i32
    return %arg1, %arg0, %c0_i32 : i32, i32, i32
  }
  func.func @transform_1(%arg0: i32, %arg1: i32) -> (i32, i32) {
    %c0_i32 = arith.constant 0 : i32
    %c0_i32_0 = arith.constant 0 : i32
    %c0_i32_1 = arith.constant 0 : i32
    return %c0_i32, %c0_i32_0 : i32, i32
  }
  func.func @transform_2(%arg0: i32, %arg1: i32) -> (i32, i32) {
    %c0_i32 = arith.constant 0 : i32
    %c0_i32_0 = arith.constant 0 : i32
    %c0_i32_1 = arith.constant 0 : i32
    return %c0_i32, %c0_i32_0 : i32, i32
  }
  func.func @transform_3(%arg0: i32, %arg1: i32) -> (i32, i32) {
    %c0_i32 = arith.constant 0 : i32
    %c0_i32_0 = arith.constant 0 : i32
    %c0_i32_1 = arith.constant 0 : i32
    return %c0_i32, %c0_i32_0 : i32, i32
  }
  func.func @transform_4(%arg0: i32, %arg1: i32) -> (i32, i32) {
    %c0_i32 = arith.constant 0 : i32
    %c0_i32_0 = arith.constant 0 : i32
    %c0_i32_1 = arith.constant 0 : i32
    return %c0_i32, %c0_i32_0 : i32, i32
  }
  func.func @transform_5(%arg0: i32, %arg1: i32) -> (i32, i32) {
    %c0_i32 = arith.constant 0 : i32
    %c0_i32_0 = arith.constant 0 : i32
    %c0_i32_1 = arith.constant 0 : i32
    return %c0_i32, %c0_i32_0 : i32, i32
  }
  func.func @transform_6(%arg0: i32, %arg1: i32) -> (i32, i32) {
    %c0_i32 = arith.constant 0 : i32
    %c0_i32_0 = arith.constant 0 : i32
    return %arg0, %c0_i32 : i32, i32
  }
}

</mosaic_0001>

<bundles_post_ra>
// kernel: tpu_custom_call.1
= control target key start
LH: loop header
LB: loop body
LE: loop exit
PB: predicated region body
PF: predicated region fallthrough
CT: control target
= control target key end

     0   :  { %s2827_s0 = inlined_call_operand.hbm [shape: f32[16,8,32], index: 0, kind: input, shape index: {}]   ;;  %s2828_s1 = inlined_call_operand.hbm [shape: f32[32,512], index: 1, kind: input, shape index: {}]   ;;  %s2829_s2 = inlined_call_operand.hbm [shape: f32[128,512], index: 2, kind: input, shape index: {}]   ;;  %s2830_s3 = inlined_call_operand.hbm [shape: f32[1,512], index: 3, kind: input, shape index: {}]   ;;  %s2831_s4 = inlined_call_operand.hbm [shape: f32[1,128], index: 4, kind: input, shape index: {}]   ;;  %s2832_s5 = inlined_call_operand.<no memory space> [shape: f32[1,1], index: 5, kind: input, shape index: {}]   ;;  %s2833_s6 = inlined_call_operand.hbm [shape: f32[8,1], index: 6, kind: output, shape index: {}]  }
   0x1   :  { %v11_v0 = vstv %s2832_s5 }
   0x2   :  { %12 = vst [vmem:[#allocation5] sm:$0x1] %v11_v0 }
   0x3   :  { %13 = vsyncpa [#allocation7], 0 }
   0x4   :  { %15 = vsyncpa [#allocation7 + $0x1], 0 }
   0x5   :  { %16 = vsyncpa [#allocation10], 0 }
   0x6   :  { %17 = vsyncpa [#allocation13], 0 }
   0x7   :  { %18 = vsyncpa [#allocation8], 0  ;;  %s2297_s23 = smov 0   ;;  %s2299_s24 = smov 0  }
   0x8   :  { %s2301_s25 = smov 0   ;;  %s2303_s26 = smov 0  }
   0x9   :  { %s2305_s27 = smov 0   ;;  %s2307_s28 = smov 0  }
   0xa LB: > { %s1493_s5 = sadd.s32 4294967295, %s2245_s28   ;;  %p58_p0 = scmp.ne.s32.totalorder %s2229_s24, %s2225_s23  ;;  %s2245_s28 = sphi %s2307_s28, %s24_s28   ;;  %s2241_s27 = sphi %s2305_s27, %s2852_s27   ;;  %s2237_s26 = sphi %s2303_s26, %s2851_s26   ;;  %s2233_s25 = sphi %s2301_s25, %s2850_s25   ;;  %s2229_s24 = sphi %s2299_s24, %s2849_s24   ;;  %s2225_s23 = sphi %s2297_s23, %s2848_s23  }
   0xb   : > { %p2329_p1 = scmp.eq.s32.totalorder %s1493_s5, 0  ;;  %p1494_p2 = scmp.ge.s32.totalorder %s2245_s28, 1 }
   0xc   : > { %p200_p3 = scmp.lt.s32.totalorder %s2245_s28, 5  ;;  %s2247_s8 = smov [#allocation9]  }
   0xd   : > { %s2838_s29 = scalar_select %p2329_p1, 1, 0 }
   0xe   : > { %p2337_p4 = por %p2329_p1, %p58_p0  ;;  %p2341_p5 = pnand %p1494_p2, %p200_p3 }
   0xf   : > { %s212_s9 = sshll.u32 %s2247_s8, 4  ;;  %s2248_s11 = smov [#allocation12]   ;;  %s2345_s9 = int_to_ptr.vmem [resolvable:$true] %s212_s9 }
  0x10   : > { %s2839_s30 = scalar_select %p2337_p4, 1, 0 }
  0x11   : > { %s2840_s7 = scalar_select %p2341_p5, 1, 0 }
  0x12   : > { %p1864_p6 = pneg %p2341_p5  ;;  %s239_s12 = sshll.u32 %s2248_s11, 4  ;;  %s2355_s12 = int_to_ptr.vmem [resolvable:$true] %s239_s12 }
  0x13   : > { %s2249_s13 = smov [#allocation11]   ;;  %s2015_s17 = scalar_lea.hbm %s2828_s1, 2048 }
  0x14   : > { %p2351_p7 = pnand %p1864_p6, %p2329_p1  ;;  %s2357_s14 = sshll.u32 %s2249_s13, 4  ;;  %s226_s14 = int_to_ptr.vmem [resolvable:$true] %s2357_s14 }
  0x15   : > { %p2016_p8 = scmp.ne.s32.totalorder %s2828_s1, %s2015_s17  ;;  %p2022_p12 = scmp.lt.u32.totalorder %s2015_s17, %s2828_s1 }
  0x16   : > { %p2367_p9 = pneg %p2351_p7 }
  0x18   : > { %p2018_p10 = pnand %p2367_p9, %p2016_p8 }
  0x1a   : > { %p2019_p11 = pneg %p2018_p10 }
  0x1c   : > { %p2024_p13 = pnand %p2022_p12, %p2019_p11 }
  0x1e   : > { %2027 = shalt.err (!%p2024_p13)
}
  0x1f   : > { %s2028_s23 = scalar_lea.vmem %s2345_s9, 2048  ;;  %p2036_p6 = scmp.lt.s32.totalorder %s2345_s9, %s2345_s9 }
  0x20   : > { %p2029_p0 = scmp.ne.s32.totalorder %s2345_s9, %s2028_s23  ;;  %p2037_p1 = scmp.lt.s32.totalorder %s2028_s23, %s2028_s23 }
  0x22   : > { %p2031_p2 = pnand %p2029_p0, %p2367_p9  ;;  %p2038_p8 = por %p2037_p1, %p2036_p6 }
  0x24   : > { %p2032_p3 = pneg %p2031_p2 }
  0x26   : > { %p2039_p10 = pnand %p2038_p8, %p2032_p3 }
  0x28   : > { %2042 = shalt.err (!%p2039_p10)
}
  0x29   : > { %s2250_s8 = smov 512   ;;  %s2251_s11 = smov 32  }
  0x2a   : > { %1867 = dma.hbm_to_vmem [thread:$0]  (!%p2351_p7), %s2828_s1, 2048, %s2345_s9, [#allocation10], %s2250_s8, %s2250_s8, %s2251_s11  }
  0x2b   : > { %s2043_s18 = scalar_lea.hbm %s2830_s3, 64 }
  0x2c   : > { %p2044_p1 = scmp.ne.s32.totalorder %s2830_s3, %s2043_s18  ;;  %p2050_p13 = scmp.lt.u32.totalorder %s2043_s18, %s2830_s3 }
  0x2e   : > { %p2046_p11 = pnand %p2044_p1, %p2367_p9 }
  0x30   : > { %p2047_p12 = pneg %p2046_p11 }
  0x32   : > { %p2052_p0 = pnand %p2050_p13, %p2047_p12 }
  0x34   : > { %2055 = shalt.err (!%p2052_p0)
}
  0x35   : > { %s2056_s9 = scalar_lea.vmem %s2355_s12, 64  ;;  %p2064_p8 = scmp.lt.s32.totalorder %s2355_s12, %s2355_s12 }
  0x36   : > { %p2057_p2 = scmp.ne.s32.totalorder %s2355_s12, %s2056_s9  ;;  %p2065_p10 = scmp.lt.s32.totalorder %s2056_s9, %s2056_s9 }
  0x38   : > { %p2059_p3 = pnand %p2057_p2, %p2367_p9  ;;  %p2066_p1 = por %p2065_p10, %p2064_p8 }
  0x3a   : > { %p2060_p6 = pneg %p2059_p3 }
  0x3c   : > { %p2067_p11 = pnand %p2066_p1, %p2060_p6 }
  0x3e   : > { %2070 = shalt.err (!%p2067_p11)
}
  0x3f   : > { %1873 = dma.hbm_to_vmem [thread:$0]  (!%p2351_p7), %s2830_s3, 64, %s2355_s12, [#allocation13]  }
  0x40   : > { %s2071_s18 = scalar_lea.hbm %s2829_s2, 8192 }
  0x41   : > { %p2072_p12 = scmp.ne.s32.totalorder %s2829_s2, %s2071_s18  ;;  %p2078_p2 = scmp.lt.u32.totalorder %s2071_s18, %s2829_s2 }
  0x43   : > { %p2074_p13 = pnand %p2072_p12, %p2367_p9 }
  0x45   : > { %p2075_p0 = pneg %p2074_p13 }
  0x47   : > { %p2080_p3 = pnand %p2078_p2, %p2075_p0 }
  0x49   : > { %2083 = shalt.err (!%p2080_p3)
}
  0x4a   : > { %s2084_s9 = scalar_lea.vmem %s226_s14, 8192  ;;  %p2092_p1 = scmp.lt.s32.totalorder %s226_s14, %s226_s14 }
  0x4b   : > { %p2085_p6 = scmp.ne.s32.totalorder %s226_s14, %s2084_s9  ;;  %p2093_p11 = scmp.lt.s32.totalorder %s2084_s9, %s2084_s9 }
  0x4d   : > { %p2087_p8 = pnand %p2085_p6, %p2367_p9  ;;  %p2094_p4 = por %p2093_p11, %p2092_p1 }
  0x4f   : > { %p2088_p10 = pneg %p2087_p8 }
  0x51   : > { %p2095_p5 = pnand %p2094_p4, %p2088_p10 }
  0x53   : > { %2098 = shalt.err (!%p2095_p5)
}
  0x54   : > { %1870 = dma.hbm_to_vmem [thread:$0]  (!%p2351_p7), %s2829_s2, 8192, %s226_s14, [#allocation10], %s2250_s8, %s2250_s8, %s2251_s11  }
  0x55   : > { %s2252_s15 = smov [#allocation14]   ;;  %s2099_s19 = scalar_lea.hbm %s2831_s4, 16 }
  0x56   : > { %s250_s16 = sshll.u32 %s2252_s15, 4  ;;  %p2100_p4 = scmp.ne.s32.totalorder %s2831_s4, %s2099_s19  ;;  %s251_s16 = int_to_ptr.vmem [resolvable:$true] %s250_s16 }
  0x57   : > { %p2106_p13 = scmp.lt.u32.totalorder %s2099_s19, %s2831_s4 }
  0x58   : > { %p2102_p5 = pnand %p2100_p4, %p2367_p9 }
  0x5a   : > { %p2103_p12 = pneg %p2102_p5 }
  0x5c   : > { %p2108_p0 = pnand %p2106_p13, %p2103_p12 }
  0x5e   : > { %2111 = shalt.err (!%p2108_p0)
}
  0x5f   : > { %s2112_s14 = scalar_lea.vmem %s251_s16, 16  ;;  %s2119_s8 = scalar_lea.vmem %s251_s16, 32 }
  0x60   : > { %p2113_p2 = scmp.ne.s32.totalorder %s251_s16, %s2112_s14  ;;  %p2120_p8 = scmp.lt.s32.totalorder %s251_s16, %s251_s16 }
  0x61   : > { %p2121_p10 = scmp.lt.s32.totalorder %s2119_s8, %s2112_s14 }
  0x62   : > { %p2115_p3 = pnand %p2113_p2, %p2367_p9 }
  0x63   : > { %p2122_p1 = por %p2121_p10, %p2120_p8 }
  0x64   : > { %p2116_p6 = pneg %p2115_p3 }
  0x66   : > { %p2123_p11 = pnand %p2122_p1, %p2116_p6 }
  0x68   : > { %2126 = shalt.err (!%p2123_p11)
}
  0x69   : > { %1876 = dma.hbm_to_vmem [thread:$0]  (!%p2351_p7), %s2831_s4, 16, %s251_s16, [#allocation13]  }
  0x6a   : > { %s33_s20 = sadd.s32 1, %s2241_s27  ;;  %s45_s13 = sadd.s32 1, %s2233_s25 }
  0x6b   : > { %p34_p9 = scmp.ge.s32.totalorder %s33_s20, 4  ;;  %p52_p4 = scmp.ne.s32.totalorder %s2233_s25, %s2229_s24 }
  0x6c   : > { %p53_p5 = scmp.eq.s32.totalorder %s2245_s28, 0  ;;  %p1885_p12 = scmp.lt.s32.totalorder %s2245_s28, 4 }
  0x6d   : > { %s2854_s20 = smov (%p34_p9, %s33_s20), 0  ;;  %s264_s10 = sand.u32 1, %s2233_s25  }
  0x6e   : > { %p54_p13 = por %p53_p5, %p52_p4  ;;  %s40_s15 = ssub.s32 %s2241_s27, %s2854_s20 }
  0x6f   : > { %p43_p0 = scmp.eq.s32.totalorder %s40_s15, 0  ;;  %s1500_s17 = sshll.u32 %s264_s10, 5 }
  0x70   : > { %s1537_s18 = sshll.u32 %s2241_s27, 9  ;;  %s268_s23 = scalar_lea.vmem [#allocation6], %s1500_s17 }
  0x71   : > { %s2467_s19 = scalar_select %p43_p0, %s2233_s25, %s45_s13  }
  0x72   : > { %s2472_s22 = scalar_lea.hbm %s2827_s0, %s1537_s18  ;;  %s276_s9 = sshll.u32 %s268_s23, 4  ;;  %s2474_s9 = int_to_ptr.vmem [resolvable:$true] %s276_s9 }
  0x73   : > { %p2478_p7 = pnand %p1885_p12, %p54_p13  ;;  %s2482_s8 = scalar_lea.sflag [#allocation7], %s264_s10 }
  0x74   : > { %s2127_s11 = scalar_lea.hbm %s2472_s22, 512  ;;  %s2132_s15 = scalar_lea.hbm %s2827_s0, 2048 }
  0x75   : > { %p2128_p2 = scmp.ne.s32.totalorder %s2472_s22, %s2127_s11  ;;  %p2129_p3 = pneg %p2478_p7 }
  0x76   : > { %p2133_p10 = scmp.lt.u32.totalorder %s2472_s22, %s2827_s0  ;;  %p2134_p1 = scmp.lt.u32.totalorder %s2132_s15, %s2127_s11 }
  0x77   : > { %p2130_p6 = pnand %p2129_p3, %p2128_p2  ;;  %p2136_p9 = scmp.lt.u32.totalorder %s2127_s11, %s2472_s22 }
  0x78   : > { %p2135_p11 = por %p2134_p1, %p2133_p10 }
  0x79   : > { %p2131_p8 = pneg %p2130_p6 }
  0x7a   : > { %p2137_p4 = por %p2136_p9, %p2135_p11 }
  0x7c   : > { %p2138_p5 = pnand %p2137_p4, %p2131_p8 }
  0x7e   : > { %2141 = shalt.err (!%p2138_p5)
}
  0x7f   : > { %s2142_s10 = scalar_lea.vmem %s2474_s9, 512  ;;  %s2253_s21 = smov [#allocation6]  }
  0x80   : > { %p2143_p12 = scmp.ne.s32.totalorder %s2474_s9, %s2142_s10  ;;  %s2147_s16 = sshll.u32 %s2253_s21, 4  ;;  %s2148_s16 = int_to_ptr.vmem [resolvable:$false] %s2147_s16 }
  0x81   : > { %s2149_s23 = scalar_lea.vmem %s2148_s16, 1024  ;;  %p2150_p2 = scmp.lt.s32.totalorder %s2474_s9, %s2148_s16 }
  0x82   : > { %p2145_p13 = pnand %p2143_p12, %p2129_p3  ;;  %p2151_p6 = scmp.lt.s32.totalorder %s2149_s23, %s2142_s10 }
  0x84   : > { %p2146_p0 = pneg %p2145_p13  ;;  %p2152_p10 = por %p2151_p6, %p2150_p2 }
  0x86   : > { %p2153_p1 = pnand %p2152_p10, %p2146_p0 }
  0x88   : > { %2156 = shalt.err (!%p2153_p1)
}
  0x89   : > { %s2254_s11 = smov 128   ;;  %s2255_s12 = smov 8  }
  0x8a   : > { %1880 = dma.hbm_to_vmem [thread:$0]  (!%p2478_p7), %s2472_s22, 512, %s2474_s9, %s2482_s8, %s2254_s11, %s2254_s11, %s2255_s12  }
  0x8b   : > { %p2844_p3 = scmp.ne.s32.totalorder %s2840_s7, 0 }
  0x8c   : > { %s290_s13 = sand.u32 (!%p2844_p3), 1, %s2229_s24   ;;  %p2845_p8 = scmp.ne.s32.totalorder (!%p2844_p3), %s2839_s30, 0 }
  0x8d   : > { %288 = sbr.rel (%p2844_p3) target bundleno = 1411 (0x583), region = 44  ;;  %s1504_s15 = sshll.u32 (!%p2844_p3), %s290_s13, 5 }
  0x8e   : > { %s291_s17 = scalar_lea.sflag (!%p2844_p3), [#allocation7], %s290_s13  ;;  %s2513_s18 = scalar_lea.vmem (!%p2844_p3), [#allocation6], %s1504_s15 }
  0x94   : > { %2208 = dma.done.wait (%p2845_p8), %s291_s17, 512  }
  0x95   : > { %2210 = vsyncadd (%p2845_p8), %s291_s17, 4294966784  ;;  %p2846_p11 = scmp.ne.s32.totalorder %s2838_s29, 0 }
  0x97   : > { %2212 = dma.done.wait (%p2846_p11), [#allocation10], 10240  }
  0x98   : > { %2214 = vsyncadd (%p2846_p11), [#allocation10], 4294957056 }
  0x99   : > { %2216 = dma.done.wait (%p2846_p11), [#allocation13], 80  }
  0x9a   : > { %2218 = vsyncadd (%p2846_p11), [#allocation13], 4294967216  ;;  %p1509_p7 = scmp.ne.s32.totalorder %s2237_s26, 0 }
  0x9b   : > { %vm341_vm0 = vcmask (!%p1509_p7), 7168   ;;  %v2256_v1 = vmov (!%p1509_p7), 0.0  }
  0x9c   : > { %338 = sbr.rel (%p1509_p7) target bundleno = 163 (0xa3), region = 68  ;;  %339 = vst [vmem:[#allocation3] sm:$0xff] (!%p1509_p7), %v2256_v1  ;;  %340 = vst [vmem:[#allocation4] sm:$0xff] (!%p1509_p7), %v2256_v1 }
  0x9d   : > { %342 = vst.msk [vmem:[#allocation15] sm:$0xff] (!%p1509_p7), %vm341_vm0, %v2256_v1 }
  0xa3 PF: > { %v348_v2 = vld [vmem:[#allocation9 + $0x8] sm:$0xff]  ;;  %v350_v4 = vld [vmem:[#allocation9 + $0x18] sm:$0xff]  ;;  %v347_v7 = vld [vmem:[#allocation9] sm:$0xff]  ;;  %v2257_v9 = vmov 0.0   ;;  %vm385_vm1 = vcmask 261120   ;;  %p1530_p9 = scmp.ne.s32.totalorder %s2237_s26, 3 }
  0xa4   : > { %v352_v3 = vld [vmem:[#allocation9 + $0x28] sm:$0xff]  ;;  %v354_v6 = vld [vmem:[#allocation9 + $0x38] sm:$0xff]  ;;  %v351_v8 = vld [vmem:[#allocation9 + $0x20] sm:$0xff]  ;;  %462 = vmatprep.mubr.f32.mxu0 %v2257_v9  ;;  %551 = vmatprep.mubr.f32.mxu1 %v2257_v9  ;;  %vm1381_vm2 = vcmask (!%p1530_p9), 7168  }
  0xa5   : > { %v1538_v5 = vpack.c.bf16 %v352_v3, %v348_v2  ;;  %v1546_v10 = vpack.c.bf16 %v354_v6, %v350_v4  ;;  %v1540_v11 = vpack.c.bf16 %v351_v8, %v347_v7  ;;  %v349_v12 = vld [vmem:[#allocation9 + $0x10] sm:$0xff]  ;;  %v356_v14 = vld [vmem:[#allocation9 + $0x48] sm:$0xff]  ;;  %v358_v17 = vld [vmem:[#allocation9 + $0x58] sm:$0xff] }
  0xa6   : > { %v353_v13 = vld [vmem:[#allocation9 + $0x30] sm:$0xff]  ;;  %v360_v16 = vld [vmem:[#allocation9 + $0x68] sm:$0xff]  ;;  %v362_v18 = vld [vmem:[#allocation9 + $0x78] sm:$0xff] }
  0xa7   : > { %1539 = vmatprep.subr.bf16.mxu0 %v1538_v5  ;;  %v1548_v15 = vpack.c.bf16 %v353_v13, %v349_v12  ;;  %1547 = vmatprep.subr.bf16.mxu1 %v1546_v10  ;;  %v1542_v19 = vpack.c.bf16 %v360_v16, %v356_v14  ;;  %v1550_v20 = vpack.c.bf16 %v362_v18, %v358_v17  ;;  %v355_v21 = vld [vmem:[#allocation9 + $0x40] sm:$0xff]  ;;  %v357_v23 = vld [vmem:[#allocation9 + $0x50] sm:$0xff]  ;;  %v593_v26 = vld [vmem:[#allocation11 + $0x8] sm:$0xff] }
  0xa8   : > { %1541 = vmatpush1.bf16.msra.mxu0 %v1540_v11  ;;  %v359_v22 = vld [vmem:[#allocation9 + $0x60] sm:$0xff]  ;;  %v361_v25 = vld [vmem:[#allocation9 + $0x70] sm:$0xff]  ;;  %v597_v27 = vld [vmem:[#allocation11 + $0x28] sm:$0xff] }
  0xa9   : > { %1549 = vmatpush1.bf16.msra.mxu1 %v1548_v15  ;;  %v1544_v24 = vpack.c.bf16 %v359_v22, %v355_v21  ;;  %1543 = vmatprep.subr.bf16.mxu0 %v1542_v19  ;;  %v1552_v28 = vpack.c.bf16 %v361_v25, %v357_v23  ;;  %v2530_v29 = vpack.c.bf16 %v597_v27, %v593_v26  ;;  %v595_v30 = vld [vmem:[#allocation11 + $0x18] sm:$0xff]  ;;  %v343_v32 = vld [vmem:[%s2513_s18] sm:$0xff]  ;;  %v594_v36 = vld [vmem:[#allocation11 + $0x10] sm:$0xff] }
  0xaa   : > { %1551 = vmatprep.subr.bf16.mxu1 %v1550_v20  ;;  %v599_v31 = vld [vmem:[#allocation11 + $0x38] sm:$0xff]  ;;  %v592_v34 = vld [vmem:[#allocation11] sm:$0xff]  ;;  %v598_v38 = vld [vmem:[#allocation11 + $0x30] sm:$0xff] }
  0xab   : > { %v2533_v33 = vpack.c.bf16 %v599_v31, %v595_v30  ;;  %v596_v35 = vld [vmem:[#allocation11 + $0x20] sm:$0xff]  ;;  %v601_v39 = vld [vmem:[#allocation11 + $0x48] sm:$0xff]  ;;  %v2538_v41 = vpack.c.bf16 %v598_v38, %v594_v36  ;;  %v603_v43 = vld [vmem:[#allocation11 + $0x58] sm:$0xff] }
  0xac   : > { %1545 = vmatpush1.bf16.msra.mxu0 %v1544_v24  ;;  %v2535_v37 = vpack.c.bf16 %v596_v35, %v592_v34  ;;  %v605_v40 = vld [vmem:[#allocation11 + $0x68] sm:$0xff]  ;;  %v607_v44 = vld [vmem:[#allocation11 + $0x78] sm:$0xff]  ;;  %v600_v45 = vld [vmem:[#allocation11 + $0x40] sm:$0xff] }
  0xad   : > { %1553 = vmatpush1.bf16.msra.mxu1 %v1552_v28  ;;  %1555 = vmatprep.subr.bf16.mxu0 %v2530_v29  ;;  %v2540_v42 = vpack.c.bf16 %v605_v40, %v601_v39  ;;  %v2543_v46 = vpack.c.bf16 %v607_v44, %v603_v43  ;;  %v604_v47 = vld [vmem:[#allocation11 + $0x60] sm:$0xff]  ;;  %v602_v48 = vld [vmem:[#allocation11 + $0x50] sm:$0xff]  ;;  %v609_v50 = vld [vmem:[#allocation11 + $0x88] sm:$0xff] }
  0xae   : > { %1587 = vmatprep.subr.bf16.mxu1 %v2533_v33  ;;  %v606_v49 = vld [vmem:[#allocation11 + $0x70] sm:$0xff]  ;;  %v613_v51 = vld [vmem:[#allocation11 + $0xa8] sm:$0xff]  ;;  %v611_v52 = vld [vmem:[#allocation11 + $0x98] sm:$0xff]  ;;  %v2548_v53 = vpack.c.bf16 %v604_v47, %v600_v45 }
  0xaf   : > { %1510 = vmatmul.mubr.msk.f32.vlgmr.msra.gmra.mrb[0].mxu0 %vm385_vm1, %v343_v32  ;;  %v615_v54 = vld [vmem:[#allocation11 + $0xb8] sm:$0xff]  ;;  %v2552_v55 = vpack.c.bf16 %v606_v49, %v602_v48  ;;  %v2554_v56 = vpack.c.bf16 %v613_v51, %v609_v50  ;;  %v608_v57 = vld [vmem:[#allocation11 + $0x80] sm:$0xff]  ;;  %v610_v59 = vld [vmem:[#allocation11 + $0x90] sm:$0xff] }
  0xb0   : > { %1514 = vmatmul.mubr.msk.f32.vlgmr.msra.gmra.mrb[0].mxu1 %vm385_vm1, %v343_v32  ;;  %1557 = vmatpush1.bf16.msra.mxu0 %v2535_v37  ;;  %v612_v58 = vld [vmem:[#allocation11 + $0xa0] sm:$0xff]  ;;  %v2557_v60 = vpack.c.bf16 %v615_v54, %v611_v52  ;;  %v614_v61 = vld [vmem:[#allocation11 + $0xb0] sm:$0xff]  ;;  %v617_v62 = vld [vmem:[#allocation11 + $0xc8] sm:$0xff] }
  0xb1   : > { %1589 = vmatpush1.bf16.msra.mxu1 %v2538_v41  ;;  %1559 = vmatprep.subr.bf16.mxu0 %v2540_v42  ;;  %v621_v63 = vld [vmem:[#allocation11 + $0xe8] sm:$0xff]  ;;  %v619_v0 = vld [vmem:[#allocation11 + $0xd8] sm:$0xff]  ;;  %v2562_v2 = vpack.c.bf16 %v612_v58, %v608_v57  ;;  %v2566_v3 = vpack.c.bf16 %v614_v61, %v610_v59  ;;  %v616_v5 = vld [vmem:[#allocation11 + $0xc0] sm:$0xff] }
  0xb2   : > { %1591 = vmatprep.subr.bf16.mxu1 %v2543_v46  ;;  %468 = vmatprep.mubr.f32.mxu0 %v2257_v9  ;;  %v623_v1 = vld [vmem:[#allocation11 + $0xf8] sm:$0xff]  ;;  %v2568_v4 = vpack.c.bf16 %v621_v63, %v617_v62  ;;  %v620_v6 = vld [vmem:[#allocation11 + $0xe0] sm:$0xff]  ;;  %v618_v7 = vld [vmem:[#allocation11 + $0xd0] sm:$0xff] }
  0xb3   : > { %557 = vmatprep.mubr.f32.mxu1 %v2257_v9  ;;  %v2571_v8 = vpack.c.bf16 %v623_v1, %v619_v0  ;;  %v622_v10 = vld [vmem:[#allocation11 + $0xf0] sm:$0xff]  ;;  %v625_v11 = vld [vmem:[#allocation11 + $0x108] sm:$0xff]  ;;  %v627_v13 = vld [vmem:[#allocation11 + $0x118] sm:$0xff]  ;;  %v2575_v16 = vpack.c.bf16 %v620_v6, %v616_v5 }
  0xb4   : > { %1561 = vmatpush1.bf16.msra.mxu0 %v2548_v53  ;;  %v629_v12 = vld [vmem:[#allocation11 + $0x128] sm:$0xff]  ;;  %v631_v14 = vld [vmem:[#allocation11 + $0x138] sm:$0xff]  ;;  %v624_v17 = vld [vmem:[#allocation11 + $0x100] sm:$0xff]  ;;  %v2580_v18 = vpack.c.bf16 %v622_v10, %v618_v7 }
  0xb5   : > { %1593 = vmatpush1.bf16.msra.mxu1 %v2552_v55  ;;  %1563 = vmatprep.subr.bf16.mxu0 %v2554_v56  ;;  %v344_v15 = vld [vmem:[%s2513_s18 + $0x8] sm:$0xff]  ;;  %v2582_v19 = vpack.c.bf16 %v629_v12, %v625_v11  ;;  %v628_v20 = vld [vmem:[#allocation11 + $0x120] sm:$0xff]  ;;  %v626_v21 = vld [vmem:[#allocation11 + $0x110] sm:$0xff]  ;;  %v2585_v23 = vpack.c.bf16 %v631_v14, %v627_v13 }
  0xb6   : > { %1595 = vmatprep.subr.bf16.mxu1 %v2557_v60  ;;  %1515 = vmatmul.mubr.msk.f32.gmra.mrb[2].mxu1 %vm385_vm1, %v344_v15  ;;  %v630_v22 = vld [vmem:[#allocation11 + $0x130] sm:$0xff]  ;;  %v633_v24 = vld [vmem:[#allocation11 + $0x148] sm:$0xff]  ;;  %v635_v27 = vld [vmem:[#allocation11 + $0x158] sm:$0xff]  ;;  %v2592_v30 = vpack.c.bf16 %v628_v20, %v624_v17  ;;  %v365_v17 = vlaneseq }
  0xb7   : > { %1511 = vmatmul.mubr.msk.f32.gmra.mrb[2].mxu0 %vm385_vm1, %v344_v15  ;;  %v637_v25 = vld [vmem:[#allocation11 + $0x168] sm:$0xff]  ;;  %v345_v26 = vld [vmem:[%s2513_s18 + $0x10] sm:$0xff]  ;;  %v639_v28 = vld [vmem:[#allocation11 + $0x178] sm:$0xff]  ;;  %563 = vmatprep.mubr.f32.mxu1 %v2257_v9  ;;  %v2597_v32 = vpack.c.bf16 %v630_v22, %v626_v21 }
  0xb8   : > { %1565 = vmatpush1.bf16.msra.mxu0 %v2562_v2  ;;  %474 = vmatprep.mubr.f32.mxu0 %v2257_v9  ;;  %v632_v31 = vld [vmem:[#allocation11 + $0x140] sm:$0xff]  ;;  %v2599_v34 = vpack.c.bf16 %v637_v25, %v633_v24  ;;  %v634_v36 = vld [vmem:[#allocation11 + $0x150] sm:$0xff]  ;;  %v346_v38 = vld [vmem:[%s2513_s18 + $0x18] sm:$0xff]  ;;  %v2603_v39 = vpack.c.bf16 %v639_v28, %v635_v27  ;;  %v366_v20 = vshrl.u32 %v365_v17, 7 }
  0xb9   : > { %1597 = vmatpush1.bf16.msra.mxu1 %v2566_v3  ;;  %1567 = vmatprep.subr.bf16.mxu0 %v2568_v4  ;;  %v636_v35 = vld [vmem:[#allocation11 + $0x160] sm:$0xff]  ;;  %v638_v40 = vld [vmem:[#allocation11 + $0x170] sm:$0xff]  ;;  %v641_v43 = vld [vmem:[#allocation11 + $0x188] sm:$0xff] }
  0xba   : > { %1599 = vmatprep.subr.bf16.mxu1 %v2571_v8  ;;  %1516 = vmatmul.mubr.msk.f32.gmra.mrb[4].mxu1 %vm385_vm1, %v345_v26  ;;  %v645_v44 = vld [vmem:[#allocation11 + $0x1a8] sm:$0xff]  ;;  %v643_v45 = vld [vmem:[#allocation11 + $0x198] sm:$0xff]  ;;  %v2609_v48 = vpack.c.bf16 %v636_v35, %v632_v31  ;;  %v2614_v49 = vpack.c.bf16 %v638_v40, %v634_v36  ;;  %v640_v51 = vld [vmem:[#allocation11 + $0x180] sm:$0xff]  ;;  %v367_v21 = vsub.s32 0, %v366_v20  ;;  %v371_v24 = vsub.s32 1, %v366_v20 }
  0xbb   : > { %1512 = vmatmul.mubr.msk.f32.gmra.mrb[4].mxu0 %vm385_vm1, %v345_v26  ;;  %v647_v47 = vld [vmem:[#allocation11 + $0x1b8] sm:$0xff]  ;;  %569 = vmatprep.mubr.f32.mxu1 %v2257_v9  ;;  %v2616_v50 = vpack.c.bf16 %v645_v44, %v641_v43  ;;  %v644_v52 = vld [vmem:[#allocation11 + $0x1a0] sm:$0xff]  ;;  %v642_v54 = vld [vmem:[#allocation11 + $0x190] sm:$0xff]  ;;  %v379_v28 = vsub.s32 3, %v366_v20 }
  0xbc   : > { %1569 = vmatpush1.bf16.msra.mxu0 %v2575_v16  ;;  %480 = vmatprep.mubr.f32.mxu0 %v2257_v9  ;;  %v2619_v57 = vpack.c.bf16 %v647_v47, %v643_v45  ;;  %v646_v58 = vld [vmem:[#allocation11 + $0x1b0] sm:$0xff]  ;;  %v649_v59 = vld [vmem:[#allocation11 + $0x1c8] sm:$0xff]  ;;  %v651_v62 = vld [vmem:[#allocation11 + $0x1d8] sm:$0xff]  ;;  %v2625_v0 = vpack.c.bf16 %v644_v52, %v640_v51  ;;  %v375_v47 = vsub.s32 2, %v366_v20 }
  0xbd   : > { %1601 = vmatpush1.bf16.msra.mxu1 %v2580_v18  ;;  %1571 = vmatprep.subr.bf16.mxu0 %v2582_v19  ;;  %v653_v61 = vld [vmem:[#allocation11 + $0x1e8] sm:$0xff]  ;;  %v655_v63 = vld [vmem:[#allocation11 + $0x1f8] sm:$0xff]  ;;  %v2629_v1 = vpack.c.bf16 %v646_v58, %v642_v54  ;;  %v648_v6 = vld [vmem:[#allocation11 + $0x1c0] sm:$0xff] }
  0xbe   : > { %1603 = vmatprep.subr.bf16.mxu1 %v2585_v23  ;;  %1517 = vmatmul.mubr.msk.f32.gmra.mrb[6].mxu1 %vm385_vm1, %v346_v38  ;;  %v2631_v5 = vpack.c.bf16 %v653_v61, %v649_v59  ;;  %v652_v7 = vld [vmem:[#allocation11 + $0x1e0] sm:$0xff]  ;;  %v2634_v10 = vpack.c.bf16 %v655_v63, %v651_v62  ;;  %v650_v11 = vld [vmem:[#allocation11 + $0x1d0] sm:$0xff] }
  0xbf   : > { %1513 = vmatmul.mubr.msk.f32.gmra.mrb[6].mxu0 %vm385_vm1, %v346_v38  ;;  %797 = vmatprep.mubr.f32.mxu1 %v2257_v9  ;;  %v654_v12 = vld [vmem:[#allocation11 + $0x1f0] sm:$0xff]  ;;  %v2637_v13 = vpack.c.bf16 %v652_v7, %v648_v6  ;;  %v363_v22 = vld [vmem:[#allocation12] sm:$0xf] }
  0xc0   : > { %1573 = vmatpush1.bf16.msra.mxu0 %v2592_v30  ;;  %726 = vmatprep.mubr.f32.mxu0 %v2257_v9  ;;  %v2641_v14 = vpack.c.bf16 %v654_v12, %v650_v11  ;;  %v656_v15 = vld [vmem:[#allocation3] sm:$0xff]  ;;  %v2682_v25 = vrot.slane %v363_v22, %v367_v21  ;;  %v2684_v26 = vrot.slane %v363_v22, %v371_v24  ;;  %v657_v11 = vld [vmem:[#allocation4] sm:$0xff] }
  0xc1   : > { %1605 = vmatpush1.bf16.msra.mxu1 %v2597_v32  ;;  %1575 = vmatprep.subr.bf16.mxu0 %v2599_v34  ;;  %v2688_v45 = vrot.slane %v363_v22, %v379_v28  ;;  %v2691_v52 = vrot.slane %v363_v22, %v375_v47 }
  0xc2   : > { %1607 = vmatprep.subr.bf16.mxu1 %v2603_v39 }
  0xc4   : > { %1577 = vmatpush1.bf16.msra.mxu0 %v2609_v48 }
  0xc5   : > { %1609 = vmatpush1.bf16.msra.mxu1 %v2614_v49  ;;  %1579 = vmatprep.subr.bf16.mxu0 %v2616_v50 }
  0xc6   : > { %1611 = vmatprep.subr.bf16.mxu1 %v2619_v57 }
  0xc8   : > { %1581 = vmatpush1.bf16.msra.mxu0 %v2625_v0 }
  0xc9   : > { %1613 = vmatpush1.bf16.msra.mxu1 %v2629_v1  ;;  %1583 = vmatprep.subr.bf16.mxu0 %v2631_v5 }
  0xca   : > { %1615 = vmatprep.subr.bf16.mxu1 %v2634_v10 }
  0xcc   : > { %1585 = vmatpush1.bf16.msra.mxu0 %v2637_v13 }
  0xcd   : > { %1617 = vmatpush1.bf16.msra.mxu1 %v2641_v14  ;;  %1619 = vmatprep.subr.bf16.mxu0 %v2530_v29 }
  0xce   : > { %1651 = vmatprep.subr.bf16.mxu1 %v2533_v33 }
  0xcf   : > { %727 = vmatmul.mubr.f32.vlgmr.msra.gmra.mrb[0].mxu0 %v656_v15 }
  0xd0   : > { %798 = vmatmul.mubr.f32.vlgmr.msra.gmra.mrb[0].mxu1 %v656_v15  ;;  %1621 = vmatpush1.bf16.msra.mxu0 %v2535_v37 }
  0xd1   : > { %1653 = vmatpush1.bf16.msra.mxu1 %v2538_v41  ;;  %1623 = vmatprep.subr.bf16.mxu0 %v2540_v42 }
  0xd2   : > { %1655 = vmatprep.subr.bf16.mxu1 %v2543_v46  ;;  %901 = vmatprep.mubr.f32.mxu0 %v2257_v9 }
  0xd3   : > { %972 = vmatprep.mubr.f32.mxu1 %v2257_v9 }
  0xd4   : > { %1625 = vmatpush1.bf16.msra.mxu0 %v2548_v53 }
  0xd5   : > { %1657 = vmatpush1.bf16.msra.mxu1 %v2552_v55  ;;  %1627 = vmatprep.subr.bf16.mxu0 %v2554_v56 }
  0xd6   : > { %1659 = vmatprep.subr.bf16.mxu1 %v2557_v60 }
  0xd8   : > { %1629 = vmatpush1.bf16.msra.mxu0 %v2562_v2 }
  0xd9   : > { %1661 = vmatpush1.bf16.msra.mxu1 %v2566_v3  ;;  %1631 = vmatprep.subr.bf16.mxu0 %v2568_v4 }
  0xda   : > { %1663 = vmatprep.subr.bf16.mxu1 %v2571_v8 }
  0xdc   : > { %1633 = vmatpush1.bf16.msra.mxu0 %v2575_v16 }
  0xdd   : > { %1665 = vmatpush1.bf16.msra.mxu1 %v2580_v18  ;;  %1635 = vmatprep.subr.bf16.mxu0 %v2582_v19 }
  0xde   : > { %1667 = vmatprep.subr.bf16.mxu1 %v2585_v23 }
  0xe0   : > { %1637 = vmatpush1.bf16.msra.mxu0 %v2592_v30 }
  0xe1   : > { %1669 = vmatpush1.bf16.msra.mxu1 %v2597_v32  ;;  %1639 = vmatprep.subr.bf16.mxu0 %v2599_v34 }
  0xe2   : > { %1671 = vmatprep.subr.bf16.mxu1 %v2603_v39 }
  0xe4   : > { %1641 = vmatpush1.bf16.msra.mxu0 %v2609_v48 }
  0xe5   : > { %1673 = vmatpush1.bf16.msra.mxu1 %v2614_v49  ;;  %1643 = vmatprep.subr.bf16.mxu0 %v2616_v50 }
  0xe6   : > { %1675 = vmatprep.subr.bf16.mxu1 %v2619_v57 }
  0xe8   : > { %1645 = vmatpush1.bf16.msra.mxu0 %v2625_v0 }
  0xe9   : > { %1677 = vmatpush1.bf16.msra.mxu1 %v2629_v1  ;;  %1647 = vmatprep.subr.bf16.mxu0 %v2631_v5 }
  0xea   : > { %1679 = vmatprep.subr.bf16.mxu1 %v2634_v10 }
  0xec   : > { %1649 = vmatpush1.bf16.msra.mxu0 %v2637_v13 }
  0xed   : > { %1681 = vmatpush1.bf16.msra.mxu1 %v2641_v14  ;;  %1683 = vmatprep.subr.bf16.mxu0 %v2530_v29 }
  0xee   : > { %1715 = vmatprep.subr.bf16.mxu1 %v2533_v33 }
 0x1a2   : > { %v728_v27 = vpop.f32.mrb[0].mxu0 }
 0x1a3   : > { %v1810_v31 = vadd.f32 %v728_v27, %v2682_v25  ;;  %v799_v35 = vpop.f32.mrb[0].mxu1  ;;  %v730_v36 = vpop.f32.mrb[1].mxu0 }
 0x1a4   : > { %v1811_v38 = vadd.f32 %v730_v36, %v2684_v26  ;;  %v801_v40 = vpop.f32.mrb[1].mxu1  ;;  %v1818_v58 = vadd.f32 %v799_v35, %v2691_v52 }
 0x1a5   : > { %v1518_v43 = vmul.f32 -1.442695, %v1810_v31  ;;  %v1819_v51 = vadd.f32 %v801_v40, %v2688_v45 }
 0x1a6   : > { %v1519_v44 = vmul.f32 -1.442695, %v1811_v38 }
 0x1a7   : > { %1951 = vpow2.f32 %v1518_v43  ;;  %v1520_v54 = vmul.f32 -1.442695, %v1819_v51 }
 0x1a8   : > { %1953 = vpow2.f32 %v1519_v44 }
 0x1a9   : > { %1955 = vpow2.f32 %v1520_v54 }
 0x1aa   : > { %1957 = vtanh.f32 %v1818_v58 }
 0x1b1   : > { %v1952_v59 = vpop.eup %1951 }
 0x1b2   : > { %v1954_v61 = vpop.eup %1953  ;;  %v811_v62 = vadd.f32 1.0, %v1952_v59 }
 0x1b3   : > { %v817_v63 = vadd.f32 1.0, %v1954_v61  ;;  %v1956_v6 = vpop.eup %1955 }
 0x1b4   : > { %1959 = vrcp.f32 %v811_v62  ;;  %v1958_v7 = vpop.eup %1957  ;;  %v824_v20 = vadd.f32 1.0, %v1956_v6 }
 0x1b5   : > { %1961 = vrcp.f32 %v817_v63 }
 0x1b6   : > { %1963 = vrcp.f32 %v824_v20 }
 0x1be   : > { %v1960_v12 = vpop.eup %1959 }
 0x1bf   : > { %v1962_v15 = vpop.eup %1961  ;;  %v828_v17 = vmul.f32 %v1960_v12, %v1958_v7 }
 0x1c0   : > { %v827_v21 = vmul.f32 %v1962_v15, %v657_v11  ;;  %v1964_v24 = vpop.eup %1963 }
 0x1c2   : > { %v2694_v22 = vadd.f32 %v828_v17, %v827_v21 }
 0x1c4   : > { %1965 = vtanh.f32 %v2694_v22 }
 0x1ce   : > { %v1966_v27 = vpop.eup %1965 }
 0x1cf   : > { %v831_v28 = vmul.f32 %v1966_v27, %v1964_v24 }
 0x1d1   : > { %902 = vmatmul.mubr.f32.vlgmr.msra.gmra.mrb[2].mxu0 %v831_v28  ;;  %973 = vmatmul.mubr.f32.vlgmr.msra.gmra.mrb[2].mxu1 %v831_v28 }
 0x1d2   : > { %1685 = vmatpush1.bf16.msra.mxu0 %v2535_v37  ;;  %1717 = vmatpush1.bf16.msra.mxu1 %v2538_v41 }
 0x1d3   : > { %1687 = vmatprep.subr.bf16.mxu0 %v2540_v42  ;;  %1719 = vmatprep.subr.bf16.mxu1 %v2543_v46 }
 0x1d4   : > { %1076 = vmatprep.mubr.f32.mxu0 %v2257_v9  ;;  %1147 = vmatprep.mubr.f32.mxu1 %v2257_v9 }
 0x1d6   : > { %1689 = vmatpush1.bf16.msra.mxu0 %v2548_v53  ;;  %1721 = vmatpush1.bf16.msra.mxu1 %v2552_v55 }
 0x1d7   : > { %1691 = vmatprep.subr.bf16.mxu0 %v2554_v56  ;;  %1723 = vmatprep.subr.bf16.mxu1 %v2557_v60 }
 0x1da   : > { %1693 = vmatpush1.bf16.msra.mxu0 %v2562_v2  ;;  %1725 = vmatpush1.bf16.msra.mxu1 %v2566_v3 }
 0x1db   : > { %1695 = vmatprep.subr.bf16.mxu0 %v2568_v4  ;;  %1727 = vmatprep.subr.bf16.mxu1 %v2571_v8 }
 0x1de   : > { %1697 = vmatpush1.bf16.msra.mxu0 %v2575_v16  ;;  %1729 = vmatpush1.bf16.msra.mxu1 %v2580_v18 }
 0x1df   : > { %1699 = vmatprep.subr.bf16.mxu0 %v2582_v19  ;;  %1731 = vmatprep.subr.bf16.mxu1 %v2585_v23 }
 0x1e2   : > { %1701 = vmatpush1.bf16.msra.mxu0 %v2592_v30  ;;  %1733 = vmatpush1.bf16.msra.mxu1 %v2597_v32 }
 0x1e3   : > { %1703 = vmatprep.subr.bf16.mxu0 %v2599_v34  ;;  %1735 = vmatprep.subr.bf16.mxu1 %v2603_v39 }
 0x1e6   : > { %1705 = vmatpush1.bf16.msra.mxu0 %v2609_v48  ;;  %1737 = vmatpush1.bf16.msra.mxu1 %v2614_v49 }
 0x1e7   : > { %1707 = vmatprep.subr.bf16.mxu0 %v2616_v50  ;;  %1739 = vmatprep.subr.bf16.mxu1 %v2619_v57 }
 0x1ea   : > { %1709 = vmatpush1.bf16.msra.mxu0 %v2625_v0  ;;  %1741 = vmatpush1.bf16.msra.mxu1 %v2629_v1 }
 0x1eb   : > { %1711 = vmatprep.subr.bf16.mxu0 %v2631_v5  ;;  %1743 = vmatprep.subr.bf16.mxu1 %v2634_v10 }
 0x1ee   : > { %1713 = vmatpush1.bf16.msra.mxu0 %v2637_v13  ;;  %1745 = vmatpush1.bf16.msra.mxu1 %v2641_v14 }
 0x1ef   : > { %1747 = vmatprep.subr.bf16.mxu0 %v2530_v29  ;;  %1779 = vmatprep.subr.bf16.mxu1 %v2533_v33 }
 0x2a4   : > { %v903_v31 = vpop.f32.mrb[2].mxu0  ;;  %v974_v35 = vpop.f32.mrb[2].mxu1 }
 0x2a5   : > { %v1812_v36 = vadd.f32 %v903_v31, %v2682_v25  ;;  %v905_v38 = vpop.f32.mrb[3].mxu0  ;;  %v976_v40 = vpop.f32.mrb[3].mxu1  ;;  %v1820_v58 = vadd.f32 %v974_v35, %v2691_v52 }
 0x2a6   : > { %v1813_v43 = vadd.f32 %v905_v38, %v2684_v26  ;;  %v1821_v51 = vadd.f32 %v976_v40, %v2688_v45 }
 0x2a7   : > { %v1521_v44 = vmul.f32 -1.442695, %v1812_v36 }
 0x2a8   : > { %v1522_v47 = vmul.f32 -1.442695, %v1813_v43  ;;  %v1523_v54 = vmul.f32 -1.442695, %v1821_v51 }
 0x2a9   : > { %1967 = vpow2.f32 %v1521_v44 }
 0x2aa   : > { %1969 = vpow2.f32 %v1522_v47 }
 0x2ab   : > { %1971 = vpow2.f32 %v1523_v54 }
 0x2ac   : > { %1973 = vtanh.f32 %v1820_v58 }
 0x2b3   : > { %v1968_v29 = vpop.eup %1967 }
 0x2b4   : > { %v1970_v59 = vpop.eup %1969  ;;  %v986_v33 = vadd.f32 1.0, %v1968_v29 }
 0x2b5   : > { %v992_v61 = vadd.f32 1.0, %v1970_v59  ;;  %v1972_v62 = vpop.eup %1971 }
 0x2b6   : > { %1975 = vrcp.f32 %v986_v33  ;;  %v1974_v63 = vpop.eup %1973  ;;  %v999_v12 = vadd.f32 1.0, %v1972_v62 }
 0x2b7   : > { %1977 = vrcp.f32 %v992_v61  ;;  %v1531_v61 = vld [vmem:[#allocation14] ss:$0 sm:$0xff] (!%p1530_p9) }
 0x2b8   : > { %1979 = vrcp.f32 %v999_v12 }
 0x2c0   : > { %v1976_v6 = vpop.eup %1975 }
 0x2c1   : > { %v1978_v7 = vpop.eup %1977  ;;  %v1003_v11 = vmul.f32 %v1976_v6, %v1974_v63  ;;  %v1532_v63 = vld [vmem:[#allocation5] ss:$0 sm:$0xff] (!%p1530_p9) }
 0x2c2   : > { %v1002_v15 = vmul.f32 %v1978_v7, %v2694_v22  ;;  %v1980_v20 = vpop.eup %1979 }
 0x2c4   : > { %v2736_v17 = vadd.f32 %v1003_v11, %v1002_v15 }
 0x2c6   : > { %1981 = vtanh.f32 %v2736_v17 }
 0x2d0   : > { %v1982_v21 = vpop.eup %1981 }
 0x2d1   : > { %v1006_v24 = vmul.f32 %v1982_v21, %v1980_v20 }
 0x2d3   : > { %1077 = vmatmul.mubr.f32.vlgmr.msra.gmra.mrb[4].mxu0 %v1006_v24  ;;  %1148 = vmatmul.mubr.f32.vlgmr.msra.gmra.mrb[4].mxu1 %v1006_v24 }
 0x2d4   : > { %1749 = vmatpush1.bf16.msra.mxu0 %v2535_v37  ;;  %1781 = vmatpush1.bf16.msra.mxu1 %v2538_v41 }
 0x2d5   : > { %1751 = vmatprep.subr.bf16.mxu0 %v2540_v42  ;;  %1783 = vmatprep.subr.bf16.mxu1 %v2543_v46 }
 0x2d6   : > { %1251 = vmatprep.mubr.f32.mxu0 %v2257_v9  ;;  %1322 = vmatprep.mubr.f32.mxu1 %v2257_v9 }
 0x2d8   : > { %1753 = vmatpush1.bf16.msra.mxu0 %v2548_v53  ;;  %1785 = vmatpush1.bf16.msra.mxu1 %v2552_v55 }
 0x2d9   : > { %1755 = vmatprep.subr.bf16.mxu0 %v2554_v56  ;;  %1787 = vmatprep.subr.bf16.mxu1 %v2557_v60 }
 0x2dc   : > { %1757 = vmatpush1.bf16.msra.mxu0 %v2562_v2  ;;  %1789 = vmatpush1.bf16.msra.mxu1 %v2566_v3 }
 0x2dd   : > { %1759 = vmatprep.subr.bf16.mxu0 %v2568_v4  ;;  %1791 = vmatprep.subr.bf16.mxu1 %v2571_v8 }
 0x2e0   : > { %1761 = vmatpush1.bf16.msra.mxu0 %v2575_v16  ;;  %1793 = vmatpush1.bf16.msra.mxu1 %v2580_v18 }
 0x2e1   : > { %1763 = vmatprep.subr.bf16.mxu0 %v2582_v19  ;;  %1795 = vmatprep.subr.bf16.mxu1 %v2585_v23 }
 0x2e4   : > { %1765 = vmatpush1.bf16.msra.mxu0 %v2592_v30  ;;  %1797 = vmatpush1.bf16.msra.mxu1 %v2597_v32 }
 0x2e5   : > { %1767 = vmatprep.subr.bf16.mxu0 %v2599_v34  ;;  %1799 = vmatprep.subr.bf16.mxu1 %v2603_v39 }
 0x2e8   : > { %1769 = vmatpush1.bf16.msra.mxu0 %v2609_v48  ;;  %1801 = vmatpush1.bf16.msra.mxu1 %v2614_v49 }
 0x2e9   : > { %1771 = vmatprep.subr.bf16.mxu0 %v2616_v50  ;;  %1803 = vmatprep.subr.bf16.mxu1 %v2619_v57 }
 0x2ec   : > { %1773 = vmatpush1.bf16.msra.mxu0 %v2625_v0  ;;  %1805 = vmatpush1.bf16.msra.mxu1 %v2629_v1 }
 0x2ed   : > { %1775 = vmatprep.subr.bf16.mxu0 %v2631_v5  ;;  %1807 = vmatprep.subr.bf16.mxu1 %v2634_v10 }
 0x2f0   : > { %1777 = vmatpush1.bf16.msra.mxu0 %v2637_v13  ;;  %1809 = vmatpush1.bf16.msra.mxu1 %v2641_v14 }
 0x3a6   : > { %v1078_v9 = vpop.f32.mrb[4].mxu0  ;;  %v1149_v37 = vpop.f32.mrb[4].mxu1 }
 0x3a7   : > { %v1814_v41 = vadd.f32 %v1078_v9, %v2682_v25  ;;  %v1080_v42 = vpop.f32.mrb[5].mxu0  ;;  %v1151_v46 = vpop.f32.mrb[5].mxu1  ;;  %v1822_v3 = vadd.f32 %v1149_v37, %v2691_v52 }
 0x3a8   : > { %v1815_v53 = vadd.f32 %v1080_v42, %v2684_v26  ;;  %v1823_v60 = vadd.f32 %v1151_v46, %v2688_v45 }
 0x3a9   : > { %v1524_v55 = vmul.f32 -1.442695, %v1814_v41 }
 0x3aa   : > { %v1525_v56 = vmul.f32 -1.442695, %v1815_v53  ;;  %v1526_v2 = vmul.f32 -1.442695, %v1823_v60 }
 0x3ab   : > { %1983 = vpow2.f32 %v1524_v55 }
 0x3ac   : > { %1985 = vpow2.f32 %v1525_v56 }
 0x3ad   : > { %1987 = vpow2.f32 %v1526_v2 }
 0x3ae   : > { %1989 = vtanh.f32 %v1822_v3 }
 0x3b5   : > { %v1984_v4 = vpop.eup %1983 }
 0x3b6   : > { %v1986_v8 = vpop.eup %1985  ;;  %v1161_v16 = vadd.f32 1.0, %v1984_v4 }
 0x3b7   : > { %v1167_v18 = vadd.f32 1.0, %v1986_v8  ;;  %v1988_v19 = vpop.eup %1987 }
 0x3b8   : > { %1991 = vrcp.f32 %v1161_v16  ;;  %v1990_v23 = vpop.eup %1989  ;;  %v1174_v39 = vadd.f32 1.0, %v1988_v19 }
 0x3b9   : > { %1993 = vrcp.f32 %v1167_v18 }
 0x3ba   : > { %1995 = vrcp.f32 %v1174_v39 }
 0x3c2   : > { %v1992_v30 = vpop.eup %1991 }
 0x3c3   : > { %v1994_v32 = vpop.eup %1993  ;;  %v1178_v34 = vmul.f32 %v1992_v30, %v1990_v23 }
 0x3c4   : > { %v1177_v48 = vmul.f32 %v1994_v32, %v2736_v17  ;;  %v1996_v50 = vpop.eup %1995 }
 0x3c6   : > { %v1179_v49 = vadd.f32 %v1178_v34, %v1177_v48 }
 0x3c8   : > { %1997 = vtanh.f32 %v1179_v49 }
 0x3d2   : > { %v1998_v57 = vpop.eup %1997 }
 0x3d3   : > { %v1181_v0 = vmul.f32 %v1998_v57, %v1996_v50 }
 0x3d5   : > { %1252 = vmatmul.mubr.f32.vlgmr.msra.gmra.mrb[6].mxu0 %v1181_v0  ;;  %1323 = vmatmul.mubr.f32.vlgmr.msra.gmra.mrb[6].mxu1 %v1181_v0 }
 0x4a8   : > { %v1253_v1 = vpop.f32.mrb[6].mxu0  ;;  %v1324_v5 = vpop.f32.mrb[6].mxu1 }
 0x4a9   : > { %v1816_v10 = vadd.f32 %v1253_v1, %v2682_v25  ;;  %v1255_v13 = vpop.f32.mrb[7].mxu0  ;;  %v1326_v14 = vpop.f32.mrb[7].mxu1  ;;  %v1824_v36 = vadd.f32 %v1324_v5, %v2691_v52 }
 0x4aa   : > { %v1817_v22 = vadd.f32 %v1255_v13, %v2684_v26  ;;  %v1825_v31 = vadd.f32 %v1326_v14, %v2688_v45 }
 0x4ab   : > { %v1527_v27 = vmul.f32 -1.442695, %v1816_v10 }
 0x4ac   : > { %v1528_v28 = vmul.f32 -1.442695, %v1817_v22  ;;  %v1529_v35 = vmul.f32 -1.442695, %v1825_v31 }
 0x4ad   : > { %1999 = vpow2.f32 %v1527_v27 }
 0x4ae   : > { %2001 = vpow2.f32 %v1528_v28 }
 0x4af   : > { %2003 = vpow2.f32 %v1529_v35 }
 0x4b0   : > { %2005 = vtanh.f32 %v1824_v36 }
 0x4b7   : > { %v2000_v38 = vpop.eup %1999 }
 0x4b8   : > { %v2002_v40 = vpop.eup %2001  ;;  %v1336_v43 = vadd.f32 1.0, %v2000_v38 }
 0x4b9   : > { %v1342_v44 = vadd.f32 1.0, %v2002_v40  ;;  %v2004_v25 = vpop.eup %2003 }
 0x4ba   : > { %2007 = vrcp.f32 %v1336_v43  ;;  %v2006_v47 = vpop.eup %2005  ;;  %v1349_v58 = vadd.f32 1.0, %v2004_v25 }
 0x4bb   : > { %2009 = vrcp.f32 %v1342_v44 }
 0x4bc   : > { %2011 = vrcp.f32 %v1349_v58 }
 0x4c4   : > { %v2008_v26 = vpop.eup %2007 }
 0x4c5   : > { %v2010_v51 = vpop.eup %2009  ;;  %v1353_v54 = vmul.f32 %v2008_v26, %v2006_v47 }
 0x4c6   : > { %v1352_v29 = vmul.f32 %v2010_v51, %v1179_v49  ;;  %v2012_v45 = vpop.eup %2011 }
 0x4c8   : > { %v1354_v59 = vadd.f32 %v1353_v54, %v1352_v29 }
 0x4ca   : > { %2013 = vtanh.f32 %v1354_v59  ;;  %1358 = vst [vmem:[#allocation4] sm:$0xff] %v1354_v59 }
 0x4d1   : > { %1362 = sbr.rel (%p1530_p9) target bundleno = 1386 (0x56a), region = 72 }
 0x4d4   : > { %v2014_v52 = vpop.eup %2013 }
 0x4d5   : > { %v1356_v33 = vmul.f32 %v2014_v52, %v2012_v45 }
 0x4d7   : > { %1357 = vst [vmem:[#allocation3] sm:$0xff] %v1356_v33  ;;  %v1370_v62 = vmul.f32 (!%p1530_p9), %v1531_v61, %v1356_v33 }
 0x4d9   : > { %1371 = vadd.xlane.f32.xlu0 %v1370_v62 }
 0x566   : > { %v1372_v6 = vpop.xlane.xlu0 %1371 }
 0x567   : > { %v1380_v7 = vadd.f32 %v1532_v63, %v1372_v6 }
 0x569   : > { %1382 = vst.msk [vmem:[#allocation15] sm:$0xff] %vm1381_vm2, %v1380_v7 }
 0x56a PF: > { %p2783_p4 = scmp.eq.s32.totalorder %s1493_s5, 3  ;;  %s2258_s30 = smov [#allocation15]  }
 0x56b   : > { %s1392_s7 = sshll.u32 %s2258_s30, 4  ;;  %s1393_s7 = int_to_ptr.vmem [resolvable:$true] %s1392_s7 }
 0x56c   : > { %s2157_s26 = scalar_lea.vmem %s1393_s7, 128  ;;  %p2164_p0 = scmp.lt.s32.totalorder %s1393_s7, %s1393_s7 }
 0x56d   : > { %p2158_p5 = scmp.ne.s32.totalorder %s1393_s7, %s2157_s26  ;;  %p2165_p2 = scmp.lt.s32.totalorder %s2157_s26, %s2157_s26 }
 0x56f   : > { %p2159_p12 = pnand %p2158_p5, %p2783_p4  ;;  %p2166_p6 = por %p2165_p2, %p2164_p0 }
 0x571   : > { %p2160_p13 = pneg %p2159_p12 }
 0x573   : > { %p2167_p10 = pnand %p2166_p6, %p2160_p13 }
 0x575   : > { %2170 = shalt.err (!%p2167_p10)
}
 0x576   : > { %s2171_s5 = scalar_lea.hbm %s2833_s6, 128 }
 0x577   : > { %p2172_p1 = scmp.ne.s32.totalorder %s2833_s6, %s2171_s5  ;;  %p2177_p11 = scmp.lt.u32.totalorder %s2171_s5, %s2833_s6 }
 0x579   : > { %p2173_p3 = pnand %p2172_p1, %p2783_p4 }
 0x57b   : > { %p2174_p8 = pneg %p2173_p3 }
 0x57d   : > { %p2179_p7 = pnand %p2177_p11, %p2174_p8 }
 0x57f   : > { %2182 = shalt.err (!%p2179_p7)
}
 0x580   : > { %1861 = dma.vmem_to_hbm [thread:$0]  (%p2783_p4), %s1393_s7, 128, %s2833_s6, [#allocation8]  }
 0x581   : > { %2220 = dma.done.wait (%p2783_p4), [#allocation8], 128  }
 0x582   : > { %2222 = vsyncadd (%p2783_p4), [#allocation8], 4294967168 }
 0x583 PF: > { %s24_s28 = sadd.s32 1, %s2245_s28   ;;  %s2848_s23 = smov %s2229_s24 }
 0x584   : > { %p21_p9 = scmp.ge.s32.totalorder %s24_s28, 6   ;;  %s2849_s24 = smov %s2233_s25 }
 0x585   : > { %s2850_s25 = smov %s2467_s19  ;;  %s2851_s26 = smov %s2241_s27 }
 0x586   : > { %s2852_s27 = smov %s2854_s20  ;;  %23 = sbr.rel (!%p21_p9) target bundleno = 10 (0xa), region = 109 }
 0x58d   :  { %1405 = vsyncpa [#allocation7], 1 }
 0x58e   :  { %1407 = vsyncpa [#allocation7 + $0x1], 1 }
 0x58f   :  { %1408 = vsyncpa [#allocation10], 1 }
 0x590   :  { %1409 = vsyncpa [#allocation13], 1 }
 0x591   :  { %1410 = vsyncpa [#allocation8], 1 }
 0x592   :  { %1412 = vsyncpa [#allocation8 + $0x1], 1 }

</bundles_post_ra>
